<compile_context>
chip_gen: v6e
topology: v6e:2x2x1
jax: 0.10.0
libtpu: 0.0.40
codegen_flags: <defaults>
</compile_context>

<pallas_src>
import functools

import jax
import jax.numpy as jnp
import numpy as np
from jax.experimental import pallas as pl
from jax.experimental.pallas import tpu as pltpu


# ---------------------------------------------------------------------------
# Kernels
# ---------------------------------------------------------------------------
def _se_fused_kernel(x_ref, w1_ref, b1_ref, w2_ref, b2_ref, o_ref):
    """Single-pass SE block: pool + gate + excite for a (nb, C, HW) slab."""
    # AdaptiveAvgPool2d(1): reduce over the spatial (lane) axis -> (nb, C).
    pooled = jnp.mean(x_ref[...], axis=2)

    # 1x1 conv #1 (BN + bias pre-folded) -> ReLU -> 1x1 conv #2 -> sigmoid.
    h = jnp.dot(pooled, w1_ref[...], preferred_element_type=jnp.float32) + b1_ref[...]
    h = jnp.maximum(h, 0.0)
    s = jnp.dot(h, w2_ref[...], preferred_element_type=jnp.float32) + b2_ref[...]
    s = 1.0 / (1.0 + jnp.exp(-s))                                   # (nb, C)

    # Excite: re-read the input ref so the multiply streams straight from the
    # pipeline's input buffer (no multi-MiB value live across the reduce).
    o_ref[...] = x_ref[...] * s[:, :, None]                         # (nb, C, HW)


def _pool_gate_kernel(x_ref, w1_ref, b1_ref, w2_ref, b2_ref, s_ref, acc_ref,
                      *, hw_total, t_hw):
    """Phase 1 of the HW-tiled path: pooled mean over HW tiles, then gate."""
    h = pl.program_id(1)

    @pl.when(h == 0)
    def _():
        acc_ref[...] = jnp.zeros_like(acc_ref)

    # Mask lanes past the end of the (possibly ragged) last spatial tile so
    # the pooled sum only covers real pixels (OOB reads may be garbage).
    lane = jax.lax.broadcasted_iota(jnp.int32, x_ref.shape, 2)
    valid = lane < (hw_total - h * t_hw)
    acc_ref[...] += jnp.sum(jnp.where(valid, x_ref[...], 0.0), axis=2)

    @pl.when(h == pl.num_programs(1) - 1)
    def _():
        pooled = acc_ref[...] * (1.0 / float(hw_total))             # (1, C)
        hid = jnp.dot(pooled, w1_ref[...],
                      preferred_element_type=jnp.float32) + b1_ref[...]
        hid = jnp.maximum(hid, 0.0)
        s = jnp.dot(hid, w2_ref[...],
                    preferred_element_type=jnp.float32) + b2_ref[...]
        s = 1.0 / (1.0 + jnp.exp(-s))                               # (1, C)
        s_ref[...] = s[:, :, None]                                  # (1, C, 1)


def _excite_kernel(x_ref, s_ref, o_ref):
    """Phase 2 of the HW-tiled path: out = x * gate, tiled over (N, HW)."""
    o_ref[...] = x_ref[...] * s_ref[...]


# ---------------------------------------------------------------------------
# Sizing policy
# ---------------------------------------------------------------------------
def _chip_profile():
    """Generation-aware block/VMEM budgets (v7x: 64 MiB VMEM, 2 TCs)."""
    vmem_cap = None
    try:
        vmem_cap = int(pltpu.get_tpu_info().vmem_capacity_bytes)
    except Exception:
        try:
            kind = jax.devices()[0].device_kind.lower()
            vmem_cap = (64 << 20) if ("v7" in kind or "7x" in kind) else (128 << 20)
        except Exception:
            vmem_cap = 64 << 20          # conservative: smallest known VMEM
    if vmem_cap <= (64 << 20):
        # v7x-like: small physical VMEM, 2 TensorCores -> smaller slabs and
        # >= 2 pipelined grid steps per core.  Real cost ~4x block (2x
        # double-buffered in + 2x out) + weights, so 6 MiB -> ~24 MiB.
        return {"block_target": 6 << 20, "vmem_limit": 44 << 20, "min_steps": 4}
    # v5e/v6e-like: 128 MiB physical VMEM, single TensorCore -> big slabs
    # (grid may collapse to one step; that's fine on a single core).
    return {"block_target": 12 << 20, "vmem_limit": 100 << 20, "min_steps": 1}


def _pick_batch_block(n, per_sample_bytes, target_bytes, min_steps):
    """Samples per grid step: fill the byte budget; no divisor-of-N needed."""
    nb = max(1, min(n, target_bytes // max(per_sample_bytes, 1)))
    if min_steps > 1 and n >= min_steps:
        # Keep >= min_steps grid steps (>= 2 per v7x TensorCore) so each
        # core still overlaps DMA with compute.
        nb = min(nb, max(1, n // min_steps))
    return int(nb)


def _fold_params(p):
    """Fold eval-mode BatchNorm and the conv1 bias into the first 1x1 conv."""
    scale = p["gamma"] / jnp.sqrt(p["running_var"] + p["eps"])      # (hidden,)
    shift = p["beta"] - p["running_mean"] * scale                   # (hidden,)
    hidden = p["w1"].shape[0]
    channels = p["w2"].shape[0]
    return {
        "w1": jnp.transpose(p["w1"]) * scale[None, :],              # (C, hidden)
        "b1": (p["b1"] * scale + shift).reshape(1, hidden),
        "w2": jnp.transpose(p["w2"]),                               # (hidden, C)
        "b2": p["b2"].reshape(1, channels),
    }


# ---------------------------------------------------------------------------
# Wrapper
# ---------------------------------------------------------------------------
def se_conv_block_pallas(x_nchw, params, *, target_block_bytes=None,
                         vmem_limit_bytes=None, allow_fast_path=True,
                         donate_x=False):
    """SE conv block forward (eval-mode BN). x_nchw: (N, C, H, W) float32."""
    x_nchw = x_nchw.astype(jnp.float32)
    N, C, H, W = x_nchw.shape
    HW = H * W
    hidden = params["w1"].shape[0]
    channels = params["w2"].shape[0]
    assert hidden >= 1, "channels // se_rate must be >= 1"
    assert params["w1"].shape[1] == C, "in_channels must match x's channel dim"
    # The final x * y broadcast requires out channels == in channels.
    assert channels == C, "channels must equal in_channels for x * y"

    f = _fold_params(params)

    # Tiny-input fast path: fixed pallas_call overhead dominates below ~1 MiB
    # and XLA fuses pool -> matmul -> sigmoid -> multiply fine at that size.
    total_bytes = N * C * HW * x_nchw.dtype.itemsize
    if allow_fast_path and total_bytes < (1 << 20):
        pooled = jnp.mean(x_nchw, axis=(2, 3))
        hdn = jnp.maximum(pooled @ f["w1"] + f["b1"], 0.0)
        s = jax.nn.sigmoid(hdn @ f["w2"] + f["b2"])
        return x_nchw * s[:, :, None, None]

    prof = _chip_profile()
    block_target = (target_block_bytes if target_block_bytes is not None
                    else prof["block_target"])
    vmem_limit = (vmem_limit_bytes if vmem_limit_bytes is not None
                  else prof["vmem_limit"])

    # NCHW -> (N, C, HW) is a contiguous reshape: no transpose, no HBM copy.
    x = x_nchw.reshape(N, C, HW)
    per_sample_bytes = C * HW * x.dtype.itemsize

    if per_sample_bytes <= block_target or HW < 256:
        # --- single-pass fused kernel: a slab of whole samples per step ----
        nb = _pick_batch_block(N, per_sample_bytes, block_target, prof["min_steps"])
        grid = (pl.cdiv(N, nb),)
        out = pl.pallas_call(
            _se_fused_kernel,
            out_shape=jax.ShapeDtypeStruct((N, C, HW), jnp.float32),
            grid_spec=pltpu.PrefetchScalarGridSpec(
                num_scalar_prefetch=0,
                grid=grid,
                in_specs=[
                    pl.BlockSpec((nb, C, HW), lambda n: (n, 0, 0)),   # x slab
                    pl.BlockSpec((C, hidden), lambda n: (0, 0)),      # w1 (BN folded)
                    pl.BlockSpec((1, hidden), lambda n: (0, 0)),      # b1 (BN folded)
                    pl.BlockSpec((hidden, C), lambda n: (0, 0)),      # w2
                    pl.BlockSpec((1, C), lambda n: (0, 0)),           # b2
                ],
                out_specs=pl.BlockSpec((nb, C, HW), lambda n: (n, 0, 0)),
            ),
            compiler_params=pltpu.CompilerParams(
                dimension_semantics=("parallel",),
                vmem_limit_bytes=vmem_limit,
            ),
            input_output_aliases=({0: 0} if donate_x else {}),
        )(x, f["w1"], f["b1"], f["w2"], f["b2"])
        return out.reshape(N, C, H, W)

    # --- HW-tiled two-phase fallback: one sample exceeds the slab budget ---
    # (large C*HW feature maps; keeps double-buffering on v7x's 64 MiB VMEM).
    t_hw = (block_target // (C * x.dtype.itemsize)) // 128 * 128
    t_hw = max(128, min(t_hw, (HW // 128) * 128))
    n_hw = pl.cdiv(HW, t_hw)

    # Phase 1: masked partial pool over HW tiles, gate at the last tile.
    gate = pl.pallas_call(
        functools.partial(_pool_gate_kernel, hw_total=HW, t_hw=t_hw),
        out_shape=jax.ShapeDtypeStruct((N, C, 1), jnp.float32),
        grid_spec=pltpu.PrefetchScalarGridSpec(
            num_scalar_prefetch=0,
            grid=(N, n_hw),
            in_specs=[
                pl.BlockSpec((1, C, t_hw), lambda n, h: (n, 0, h)),
                pl.BlockSpec((C, hidden), lambda n, h: (0, 0)),
                pl.BlockSpec((1, hidden), lambda n, h: (0, 0)),
                pl.BlockSpec((hidden, C), lambda n, h: (0, 0)),
                pl.BlockSpec((1, C), lambda n, h: (0, 0)),
            ],
            out_specs=pl.BlockSpec((1, C, 1), lambda n, h: (n, 0, 0)),
            scratch_shapes=[pltpu.VMEM((1, C), jnp.float32)],
        ),
        compiler_params=pltpu.CompilerParams(
            dimension_semantics=("parallel", "arbitrary"),
            vmem_limit_bytes=vmem_limit,
        ),
    )(x, f["w1"], f["b1"], f["w2"], f["b2"])

    # Phase 2: lane-dense elementwise excite, tiled over (N, HW).
    out = pl.pallas_call(
        _excite_kernel,
        out_shape=jax.ShapeDtypeStruct((N, C, HW), jnp.float32),
        grid_spec=pltpu.PrefetchScalarGridSpec(
            num_scalar_prefetch=0,
            grid=(N, n_hw),
            in_specs=[
                pl.BlockSpec((1, C, t_hw), lambda n, h: (n, 0, h)),
                pl.BlockSpec((1, C, 1), lambda n, h: (n, 0, 0)),
            ],
            out_specs=pl.BlockSpec((1, C, t_hw), lambda n, h: (n, 0, h)),
        ),
        compiler_params=pltpu.CompilerParams(
            dimension_semantics=("parallel", "parallel"),
            vmem_limit_bytes=vmem_limit,
        ),
        input_output_aliases=({0: 0} if donate_x else {}),
    )(x, gate)
    return out.reshape(N, C, H, W)


# ---------------------------------------------------------------------------
# Params / reference
# ---------------------------------------------------------------------------
def init_params(key, in_channels, channels, se_rate=12):
    """PyTorch-layout parameters with non-trivial BN running statistics."""
    hidden = int(channels // se_rate)
    assert hidden >= 1, "channels // se_rate must be >= 1"
    k = jax.random.split(key, 8)
    return {
        # Conv2d(in_channels, hidden, 1): weight (hidden, in_channels) + bias
        "w1": 0.1 * jax.random.normal(k[0], (hidden, in_channels), jnp.float32),
        "b1": 0.1 * jax.random.normal(k[1], (hidden,), jnp.float32),
        # BatchNorm2d(hidden), eval mode, non-trivial running statistics.
        "gamma": 1.0 + 0.1 * jax.random.normal(k[2], (hidden,), jnp.float32),
        "beta": 0.1 * jax.random.normal(k[3], (hidden,), jnp.float32),
        "running_mean": 0.2 * jax.random.normal(k[4], (hidden,), jnp.float32),
        "running_var": jnp.abs(1.0 + 0.2 * jax.random.normal(k[5], (hidden,), jnp.float32)),
        "eps": 1e-5,
        # Conv2d(hidden, channels, 1): weight (channels, hidden) + bias
        "w2": 0.1 * jax.random.normal(k[6], (channels, hidden), jnp.float32),
        "b2": 0.1 * jax.random.normal(k[7], (channels,), jnp.float32),
    }


def se_conv_block_ref(x, p):
    """Pure-JAX reference of the PyTorch module in eval mode (unfolded BN)."""
    pooled = jnp.mean(x, axis=(2, 3))                               # (N, C)
    h = pooled @ p["w1"].T + p["b1"]                                # (N, hidden)
    h = (h - p["running_mean"]) * (p["gamma"]
        / jnp.sqrt(p["running_var"] + p["eps"])) + p["beta"]
    h = jnp.maximum(h, 0.0)
    s = jax.nn.sigmoid(h @ p["w2"].T + p["b2"])                     # (N, C)
    return x * s[:, :, None, None]


if __name__ == "__main__":
    key = jax.random.PRNGKey(0)
    kx1, kx2, kx3, kp1, kp2, kp3 = jax.random.split(key, 6)

    # Case 1: demo shape (2, 24, 16, 16), se_rate=12 (hidden=2).
    #   a) default -> tiny-input fast path; b) forced Pallas fused kernel.
    x1 = jax.random.normal(kx1, (2, 24, 16, 16), jnp.float32)
    p1 = init_params(kp1, 24, 24, se_rate=12)
    ref1 = se_conv_block_ref(x1, p1)
    out_fast = jax.block_until_ready(se_conv_block_pallas(x1, p1))
    np.testing.assert_allclose(np.asarray(out_fast), np.asarray(ref1),
                               rtol=1e-4, atol=1e-5)
    out_pal = jax.block_until_ready(
        se_conv_block_pallas(x1, p1, allow_fast_path=False))
    np.testing.assert_allclose(np.asarray(out_pal), np.asarray(ref1),
                               rtol=1e-4, atol=1e-5)

    # Case 2: ragged batch (N=3, nb=2 -> cdiv grid) + non-trivial BN stats.
    x2 = jax.random.normal(kx2, (3, 32, 16, 16), jnp.float32)
    p2 = init_params(kp2, 32, 32, se_rate=8)
    out2 = jax.block_until_ready(se_conv_block_pallas(
        x2, p2, allow_fast_path=False, target_block_bytes=64 << 10))
    np.testing.assert_allclose(np.asarray(out2),
                               np.asarray(se_conv_block_ref(x2, p2)),
                               rtol=1e-4, atol=1e-5)

    # Case 3: force the HW-tiled two-phase fallback (sample > block budget,
    # ragged spatial tile: HW=576 with t_hw=512).
    x3 = jax.random.normal(kx3, (2, 8, 24, 24), jnp.float32)
    p3 = init_params(kp3, 8, 8, se_rate=4)
    out3 = jax.block_until_ready(se_conv_block_pallas(
        x3, p3, allow_fast_path=False, target_block_bytes=16 << 10))
    np.testing.assert_allclose(np.asarray(out3),
                               np.asarray(se_conv_block_ref(x3, p3)),
                               rtol=1e-4, atol=1e-5)

    print("KERNEL_OK")
</pallas_src>

<mosaic_0001>
module attributes {stable_mosaic.version = 11 : i64} {
  func.func @_se_fused_kernel(%arg0: i32, %arg1: memref<2x24x256xf32, #tpu.memory_space<vmem>>, %arg2: memref<24x2xf32, #tpu.memory_space<vmem>>, %arg3: memref<1x2xf32, #tpu.memory_space<vmem>>, %arg4: memref<2x24xf32, #tpu.memory_space<vmem>>, %arg5: memref<1x24xf32, #tpu.memory_space<vmem>>, %arg6: memref<2x24x256xf32, #tpu.memory_space<vmem>>) attributes {dimension_semantics = [#tpu.dimension_semantics<parallel>], iteration_bounds = array<i64: 1>, scalar_prefetch = 0 : i64, scratch_operands = 0 : i64, tpu.core_type = #tpu.core_type<tc>, window_params = [{transform_indices = @transform_0, window_bounds = array<i64: 2, 24, 256>}, {pipeline_mode = #tpu.pipeline_mode<synchronous>, transform_indices = @transform_1, window_bounds = array<i64: 24, 2>}, {pipeline_mode = #tpu.pipeline_mode<synchronous>, transform_indices = @transform_2, window_bounds = array<i64: 1, 2>}, {pipeline_mode = #tpu.pipeline_mode<synchronous>, transform_indices = @transform_3, window_bounds = array<i64: 2, 24>}, {pipeline_mode = #tpu.pipeline_mode<synchronous>, transform_indices = @transform_4, window_bounds = array<i64: 1, 24>}, {transform_indices = @transform_5, window_bounds = array<i64: 2, 24, 256>}]} {
    %c0 = arith.constant 0 : index
    %c0_0 = arith.constant 0 : index
    %c0_1 = arith.constant 0 : index
    %0 = vector.load %arg1[%c0, %c0_0, %c0_1] : memref<2x24x256xf32, #tpu.memory_space<vmem>>, vector<2x24x256xf32>
    %cst = arith.constant dense<0.000000e+00> : vector<2x24xf32>
    %1 = vector.multi_reduction <add>, %0, %cst [2] : vector<2x24x256xf32> to vector<2x24xf32>
    %cst_2 = arith.constant 2.560000e+02 : f32
    %2 = vector.broadcast %cst_2 : f32 to vector<2x24xf32>
    %3 = arith.divf %1, %2 : vector<2x24xf32>
    %c0_3 = arith.constant 0 : index
    %c0_4 = arith.constant 0 : index
    %4 = vector.load %arg2[%c0_3, %c0_4] : memref<24x2xf32, #tpu.memory_space<vmem>>, vector<24x2xf32>
    %cst_5 = arith.constant dense<0.000000e+00> : vector<2x2xf32>
    %5 = tpu.matmul %3, %4, %cst_5 {dimension_numbers = #tpu.dot_dimension_numbers<[1], [0], [0], [1], [0, 0, 1, 1], [], []>} : vector<2x24xf32>, vector<24x2xf32>, vector<2x2xf32> -> vector<2x2xf32>
    %c0_6 = arith.constant 0 : index
    %c0_7 = arith.constant 0 : index
    %6 = vector.load %arg3[%c0_6, %c0_7] : memref<1x2xf32, #tpu.memory_space<vmem>>, vector<1x2xf32>
    %7 = vector.broadcast %6 : vector<1x2xf32> to vector<2x2xf32>
    %8 = arith.addf %5, %7 : vector<2x2xf32>
    %cst_8 = arith.constant 0.000000e+00 : f32
    %9 = vector.broadcast %cst_8 : f32 to vector<2x2xf32>
    %10 = arith.maximumf %8, %9 : vector<2x2xf32>
    %c0_9 = arith.constant 0 : index
    %c0_10 = arith.constant 0 : index
    %11 = vector.load %arg4[%c0_9, %c0_10] : memref<2x24xf32, #tpu.memory_space<vmem>>, vector<2x24xf32>
    %cst_11 = arith.constant dense<0.000000e+00> : vector<2x24xf32>
    %12 = tpu.matmul %10, %11, %cst_11 {dimension_numbers = #tpu.dot_dimension_numbers<[1], [0], [0], [1], [0, 0, 1, 1], [], []>} : vector<2x2xf32>, vector<2x24xf32>, vector<2x24xf32> -> vector<2x24xf32>
    %c0_12 = arith.constant 0 : index
    %c0_13 = arith.constant 0 : index
    %13 = vector.load %arg5[%c0_12, %c0_13] : memref<1x24xf32, #tpu.memory_space<vmem>>, vector<1x24xf32>
    %14 = vector.broadcast %13 : vector<1x24xf32> to vector<2x24xf32>
    %15 = arith.addf %12, %14 : vector<2x24xf32>
    %cst_14 = arith.constant 0.000000e+00 : f32
    %16 = vector.broadcast %cst_14 : f32 to vector<2x24xf32>
    %17 = arith.subf %16, %15 : vector<2x24xf32>
    %18 = math.exp %17 : vector<2x24xf32>
    %cst_15 = arith.constant 1.000000e+00 : f32
    %19 = vector.broadcast %cst_15 : f32 to vector<2x24xf32>
    %20 = arith.addf %19, %18 : vector<2x24xf32>
    %cst_16 = arith.constant 1.000000e+00 : f32
    %21 = vector.broadcast %cst_16 : f32 to vector<2x24xf32>
    %22 = arith.divf %21, %20 : vector<2x24xf32>
    %c0_17 = arith.constant 0 : index
    %c0_18 = arith.constant 0 : index
    %c0_19 = arith.constant 0 : index
    %23 = vector.load %arg1[%c0_17, %c0_18, %c0_19] : memref<2x24x256xf32, #tpu.memory_space<vmem>>, vector<2x24x256xf32>
    %24 = vector.shape_cast %22 : vector<2x24xf32> to vector<2x24x1xf32>
    %25 = vector.broadcast %24 : vector<2x24x1xf32> to vector<2x24x256xf32>
    %26 = arith.mulf %23, %25 : vector<2x24x256xf32>
    %c0_20 = arith.constant 0 : index
    %c0_21 = arith.constant 0 : index
    %c0_22 = arith.constant 0 : index
    %27 = vector.load %arg6[%c0_20, %c0_21, %c0_22] : memref<2x24x256xf32, #tpu.memory_space<vmem>>, vector<2x24x256xf32>
    tpu.vector_store %arg6[%c0_20, %c0_21, %c0_22], %26 {strides = array<i32>} : memref<2x24x256xf32, #tpu.memory_space<vmem>>, vector<2x24x256xf32>,
    return
  }
  func.func @transform_0(%arg0: i32) -> (i32, i32, i32) {
    %c0_i32 = arith.constant 0 : i32
    %c0_i32_0 = arith.constant 0 : i32
    %c0_i32_1 = arith.constant 0 : i32
    return %arg0, %c0_i32, %c0_i32_0 : i32, i32, i32
  }
  func.func @transform_1(%arg0: i32) -> (i32, i32) {
    %c0_i32 = arith.constant 0 : i32
    %c0_i32_0 = arith.constant 0 : i32
    %c0_i32_1 = arith.constant 0 : i32
    return %c0_i32, %c0_i32_0 : i32, i32
  }
  func.func @transform_2(%arg0: i32) -> (i32, i32) {
    %c0_i32 = arith.constant 0 : i32
    %c0_i32_0 = arith.constant 0 : i32
    %c0_i32_1 = arith.constant 0 : i32
    return %c0_i32, %c0_i32_0 : i32, i32
  }
  func.func @transform_3(%arg0: i32) -> (i32, i32) {
    %c0_i32 = arith.constant 0 : i32
    %c0_i32_0 = arith.constant 0 : i32
    %c0_i32_1 = arith.constant 0 : i32
    return %c0_i32, %c0_i32_0 : i32, i32
  }
  func.func @transform_4(%arg0: i32) -> (i32, i32) {
    %c0_i32 = arith.constant 0 : i32
    %c0_i32_0 = arith.constant 0 : i32
    %c0_i32_1 = arith.constant 0 : i32
    return %c0_i32, %c0_i32_0 : i32, i32
  }
  func.func @transform_5(%arg0: i32) -> (i32, i32, i32) {
    %c0_i32 = arith.constant 0 : i32
    %c0_i32_0 = arith.constant 0 : i32
    %c0_i32_1 = arith.constant 0 : i32
    return %arg0, %c0_i32, %c0_i32_0 : i32, i32, i32
  }
}

</mosaic_0001>

<bundles_post_ra>
// kernel: tpu_custom_call.1
= control target key start
LH: loop header
LB: loop body
LE: loop exit
PB: predicated region body
PF: predicated region fallthrough
CT: control target
= control target key end

     0   :  { %10 = vsyncpa [#allocation3], 0  ;;  %s554_s0 = inlined_call_operand.hbm [shape: f32[2,24,256], index: 0, kind: input, shape index: {}]   ;;  %s555_s1 = inlined_call_operand.vmem [shape: f32[24,2], index: 1, kind: input, shape index: {}]   ;;  %s556_s2 = inlined_call_operand.vmem [shape: f32[1,2], index: 2, kind: input, shape index: {}]   ;;  %s557_s3 = inlined_call_operand.vmem [shape: f32[2,24], index: 3, kind: input, shape index: {}]   ;;  %s558_s4 = inlined_call_operand.vmem [shape: f32[1,24], index: 4, kind: input, shape index: {}]   ;;  %s559_s5 = inlined_call_operand.hbm [shape: f32[2,24,256], index: 5, kind: output, shape index: {}]  }
   0x1   :  { %11 = vsyncpa [#allocation4], 0  ;;  %s440_s18 = smov [#allocation2]  }
   0x2   :  { %s17_s19 = sshll.u32 %s440_s18, 4  ;;  %s18_s19 = int_to_ptr.vmem [resolvable:$true] %s17_s19 }
   0x3   :  { %s404_s20 = scalar_lea.vmem %s18_s19, 1536  ;;  %p409_p1 = scmp.lt.s32.totalorder %s18_s19, %s18_s19 }
   0x4   :  { %p405_p0 = scmp.ne.s32.totalorder %s18_s19, %s404_s20  ;;  %p410_p2 = scmp.lt.s32.totalorder %s404_s20, %s404_s20 }
   0x6   :  { %p411_p3 = por %p410_p2, %p409_p1 }
   0x8   :  { %p412_p4 = pnand %p411_p3, %p405_p0 }
   0xa   :  { %415 = shalt.err (!%p412_p4)
}
   0xb   :  { %s441_s21 = smov 256   ;;  %s442_s22 = smov 16  }
   0xc   :  { %23 = dma.hbm_to_vmem [thread:$0]  %s554_s0, 1536, %s18_s19, [#allocation3], %s441_s21, %s441_s21, %s442_s22  }
   0xd   :  { %436 = dma.done.wait [#allocation3], 1536  }
   0xe   :  { %437 = vsyncadd [#allocation3], 4294965760  ;;  %v482_v0 = vld [vmem:[#allocation2 + $0x30] sm:$0xff]  ;;  %v484_v1 = vld [vmem:[#allocation2 + $0x38] sm:$0xff]  ;;  %v443_v18 = vmov 0.0   ;;  %vm444_vm0 = vmmov 0   ;;  %v88_v22 = vlaneseq }
   0xf   :  { %v486_v2 = vld [vmem:[#allocation2] sm:$0xff]  ;;  %v56_v3 = vadd.f32 %v484_v1, %v482_v0  ;;  %v490_v4 = vld [vmem:[#allocation2 + $0x8] sm:$0xff]  ;;  %v498_v8 = vld [vmem:[#allocation2 + $0x10] sm:$0xff]  ;;  %372 = vmatprep.subr.mxu0 %v443_v18  ;;  %381 = vmatprep.subr.mxu1 %v443_v18  ;;  %vm99_vm1 = vcmask 130112   ;;  %vm106_vm2 = vcmask 195712   ;;  %vm122_vm3 = vcmask 1041409  }
  0x10   :  { %v492_v5 = vld [vmem:[#allocation2 + $0x40] sm:$0xff]  ;;  %v494_v6 = vld [vmem:[#allocation2 + $0x48] sm:$0xff]  ;;  %v47_v7 = vadd.f32 %v490_v4, %v486_v2  ;;  %v500_v9 = vld [vmem:[#allocation2 + $0x18] sm:$0xff]  ;;  %378 = vmatprep.mubr.msk.f32.mxu0 %vm444_vm0, %v443_v18  ;;  %383 = vmatprep.mubr.msk.f32.mxu1 %vm444_vm0, %v443_v18  ;;  %v89_v23 = vand.u32 127, %v88_v22  ;;  %v91_v27 = vshrl.u32 %v88_v22, 7  ;;  %vm124_vm4 = vcmask 195584  }
  0x11   :  { %57 = vadd.xlane.f32.xlu1 %v56_v3  ;;  %v59_v10 = vadd.f32 %v494_v6, %v492_v5  ;;  %v50_v11 = vadd.f32 %v500_v9, %v498_v8  ;;  %v506_v12 = vld [vmem:[#allocation2 + $0x50] sm:$0xff]  ;;  %v508_v13 = vld [vmem:[#allocation2 + $0x58] sm:$0xff]  ;;  %v510_v14 = vld [vmem:[#allocation2 + $0x20] sm:$0xff]  ;;  %vm210_vm5 = vcmask 1041408   ;;  %vm206_vm6 = vcmask 15360  }
  0x12   :  { %48 = vadd.xlane.f32.xlu0 %v47_v7  ;;  %v512_v15 = vld [vmem:[#allocation2 + $0x28] sm:$0xff]  ;;  %v62_v16 = vadd.f32 %v508_v13, %v506_v12  ;;  %v74_v19 = vld [vmem:[%s555_s1 + $0x10] sm:$0xff]  ;;  %v72_v21 = vld [vmem:[%s555_s1] sm:$0xff]  ;;  %v94_v25 = vadd.s32 4294967288, %v89_v23  ;;  %v101_v28 = vadd.s32 4294967280, %v89_v23  ;;  %v92_v33 = vsub.s32 %v89_v23, %v91_v27 }
  0x13   :  { %v53_v17 = vadd.f32 %v512_v15, %v510_v14  ;;  %373 = vmatpush3.msra.mxu0 %v74_v19  ;;  %v73_v20 = vld [vmem:[%s555_s1 + $0x8] sm:$0xff]  ;;  %v198_v53 = vld [vmem:[%s557_s3] sm:$0x3] }
  0x14   :  { %374 = vmatprep.subr.mxu0 %v443_v18  ;;  %v97_v29 = vsub.s32 %v94_v25, %v91_v27  ;;  %v104_v37 = vsub.s32 %v101_v28, %v91_v27  ;;  %382 = vmatpush3.msk.msra.mxu1 %vm210_vm5, %v198_v53  ;;  %v361_v54 = vld [vmem:[%s556_s2] ss:$0 sm:$0xff]  ;;  %s445_s2 = smov [#allocation5]  }
  0x15   :  { %60 = vadd.xlane.f32.xlu1 %v59_v10  ;;  %375 = vmatpush3.msra.mxu0 %v73_v20  ;;  %v363_v59 = vld [vmem:[%s558_s4] ss:$0 sm:$0xff]  ;;  %s349_s3 = sshll.u32 %s445_s2, 4  ;;  %s350_s3 = int_to_ptr.vmem [resolvable:$true] %s349_s3 }
  0x16   :  { %51 = vadd.xlane.f32.xlu0 %v50_v11  ;;  %376 = vmatprep.subr.mxu0 %v443_v18  ;;  %v292_v11 = vsub.s32 0, %v91_v27  ;;  %v307_v18 = vsub.s32 1, %v91_v27  ;;  %s416_s4 = scalar_lea.vmem %s350_s3, 1536  ;;  %p421_p6 = scmp.lt.s32.totalorder %s350_s3, %s350_s3 }
  0x17   :  { %377 = vmatpush3.msra.mxu0 %v72_v21  ;;  %p417_p5 = scmp.ne.s32.totalorder %s350_s3, %s416_s4  ;;  %p422_p7 = scmp.lt.s32.totalorder %s416_s4, %s416_s4 }
  0x19   :  { %63 = vadd.xlane.f32.xlu1 %v62_v16  ;;  %p423_p8 = por %p422_p7, %p421_p6 }
  0x1a   :  { %54 = vadd.xlane.f32.xlu0 %v53_v17 }
  0x1b   :  { %p424_p9 = pnand %p423_p8, %p417_p5 }
  0x9a   :  { %v58_v24 = vpop.xlane.xlu1 %57 }
  0x9b   :  { %v49_v26 = vpop.xlane.xlu0 %48  ;;  %v69_v34 = vmul.f32 0.00390625, %v58_v24 }
  0x9c   :  { %v66_v36 = vmul.f32 0.00390625, %v49_v26 }
  0x9d   :  { %v111_v43 = vrot.slane %v69_v34, %v92_v33 }
  0x9e   :  { %v61_v30 = vpop.xlane.xlu1 %60  ;;  %v93_v45 = vrot.slane %v66_v36, %v92_v33 }
  0x9f   :  { %v70_v31 = vmul.f32 0.00390625, %v61_v30  ;;  %v52_v32 = vpop.xlane.xlu0 %51 }
  0xa0   :  { %v67_v35 = vmul.f32 0.00390625, %v52_v32 }
  0xa1   :  { %v115_v38 = vrot.slane %v70_v31, %v97_v29 }
  0xa2   :  { %v64_v39 = vpop.xlane.xlu1 %63  ;;  %v98_v40 = vrot.slane %v67_v35, %v97_v29 }
  0xa3   :  { %v71_v41 = vmul.f32 0.00390625, %v64_v39  ;;  %v55_v42 = vpop.xlane.xlu0 %54  ;;  %v116_v47 = vsel %vm99_vm1, %v115_v38, %v111_v43 }
  0xa4   :  { %v68_v44 = vmul.f32 0.00390625, %v55_v42  ;;  %v100_v49 = vsel %vm99_vm1, %v98_v40, %v93_v45 }
  0xa5   :  { %v120_v46 = vrot.slane %v71_v41, %v104_v37 }
  0xa6   :  { %v105_v48 = vrot.slane %v68_v44, %v104_v37 }
  0xa7   :  { %v121_v50 = vsel %vm106_vm2, %v120_v46, %v116_v47 }
  0xa8   :  { %v107_v51 = vsel %vm106_vm2, %v105_v48, %v100_v49 }
  0xa9   :  { %v123_v52 = vsel %vm122_vm3, %v121_v50, %v107_v51 }
  0xaa   :  { %379 = vmatmul.mubr.msk.f32.vlgmr.msra.gmra.mxu0 %vm124_vm4, %v123_v52 }
 0x16a   :  { %v193_v55 = vpop.f32.mrf.mxu0 }
 0x16b   :  { %v194_v56 = vadd.f32 %v361_v54, %v193_v55 }
 0x16c   :  { %v380_v57 = vpop.f32.mrf.mxu0 }
 0x16d   :  { %v197_v58 = vmax.f32 %v194_v56, 0.0 }
 0x16f   :  { %384 = vmatmul.mubr.msk.f32.vlgmr.msra.gmra.mxu1 %vm206_vm6, %v197_v58 }
 0x22f   :  { %v280_v60 = vpop.f32.mrf.mxu1 }
 0x230   :  { %v281_v61 = vadd.f32 %v363_v59, %v280_v60 }
 0x231   :  { %v385_v62 = vpop.f32.mrf.mxu1 }
 0x232   :  { %v284_v63 = vsub.f32 0.0, %v281_v61 }
 0x234   :  { %v285_v3 = vmul.f32 1.442695, %v284_v63 }
 0x236   :  { %392 = vpow2.f32 %v285_v3 }
 0x243   :  { %v393_v7 = vpop.eup %392 }
 0x244   :  { %v287_v10 = vadd.f32 1.0, %v393_v7 }
 0x246   :  { %394 = vrcp.f32 %v287_v10 }
 0x253   :  { %v395_v16 = vpop.eup %394 }
 0x254   :  { %v293_v17 = vrot.slane %v395_v16, %v292_v11  ;;  %v308_v19 = vrot.slane %v395_v16, %v307_v18 }
 0x256   :  { %299 = vbcast.lane.b32.xlu1 %v293_v17, 264  ;;  %295 = vbcast.lane.b32.xlu0 %v293_v17, 256 }
 0x25a   :  { %303 = vbcast.lane.b32.xlu1 %v293_v17, 272  ;;  %314 = vbcast.lane.b32.xlu0 %v308_v19, 264 }
 0x25e   :  { %310 = vbcast.lane.b32.xlu1 %v308_v19, 256 }
 0x262   :  { %318 = vbcast.lane.b32.xlu1 %v308_v19, 272 }
 0x2c8   :  { %v300_v20 = vpop.permute.xlu1 %299  ;;  %v296_v21 = vpop.permute.xlu0 %295 }
 0x2c9   :  { %v322_v22 = vmul.f32 %v300_v20, %v498_v8  ;;  %v323_v23 = vmul.f32 %v300_v20, %v500_v9  ;;  %v320_v24 = vmul.f32 %v296_v21, %v486_v2  ;;  %v321_v25 = vmul.f32 %v296_v21, %v490_v4 }
 0x2cb   :  { %334 = vst [vmem:[#allocation5 + $0x10] sm:$0xff] %v322_v22  ;;  %335 = vst [vmem:[#allocation5 + $0x18] sm:$0xff] %v323_v23 }
 0x2cc   :  { %332 = vst [vmem:[#allocation5] sm:$0xff] %v320_v24  ;;  %333 = vst [vmem:[#allocation5 + $0x8] sm:$0xff] %v321_v25  ;;  %v304_v26 = vpop.permute.xlu1 %303  ;;  %v315_v27 = vpop.permute.xlu0 %314 }
 0x2cd   :  { %v324_v28 = vmul.f32 %v304_v26, %v510_v14  ;;  %v325_v29 = vmul.f32 %v304_v26, %v512_v15  ;;  %v328_v30 = vmul.f32 %v315_v27, %v492_v5  ;;  %v329_v8 = vmul.f32 %v315_v27, %v494_v6 }
 0x2cf   :  { %336 = vst [vmem:[#allocation5 + $0x20] sm:$0xff] %v324_v28  ;;  %337 = vst [vmem:[#allocation5 + $0x28] sm:$0xff] %v325_v29 }
 0x2d0   :  { %340 = vst [vmem:[#allocation5 + $0x40] sm:$0xff] %v328_v30  ;;  %341 = vst [vmem:[#allocation5 + $0x48] sm:$0xff] %v329_v8  ;;  %v311_v2 = vpop.permute.xlu1 %310 }
 0x2d1   :  { %v326_v4 = vmul.f32 %v311_v2, %v482_v0  ;;  %v327_v9 = vmul.f32 %v311_v2, %v484_v1 }
 0x2d3   :  { %338 = vst [vmem:[#allocation5 + $0x30] sm:$0xff] %v326_v4  ;;  %339 = vst [vmem:[#allocation5 + $0x38] sm:$0xff] %v327_v9 }
 0x2d4   :  { %v319_v14 = vpop.permute.xlu1 %318 }
 0x2d5   :  { %v330_v15 = vmul.f32 %v319_v14, %v506_v12  ;;  %v331_v5 = vmul.f32 %v319_v14, %v508_v13 }
 0x2d7   :  { %342 = vst [vmem:[#allocation5 + $0x50] sm:$0xff] %v330_v15  ;;  %343 = vst [vmem:[#allocation5 + $0x58] sm:$0xff] %v331_v5 }
 0x2d8   :  { %427 = shalt.err (!%p424_p9)
}
 0x2d9   :  { %355 = dma.vmem_to_hbm [thread:$0]  %s350_s3, 1536, %s559_s5, [#allocation4], %s441_s21, %s441_s21, %s442_s22  }
 0x2da   :  { %438 = dma.done.wait [#allocation4], 1536  }
 0x2db   :  { %439 = vsyncadd [#allocation4], 4294965760 }
 0x2dc   :  { %359 = vsyncpa [#allocation3], 1 }
 0x2dd   :  { %360 = vsyncpa [#allocation4], 1 }

</bundles_post_ra>
